<compile_context>
chip_gen: v7x
topology: tpu7x:2x2x1
jax: 0.10.0
libtpu: 0.0.40
codegen_flags: <defaults>
</compile_context>

<pallas_src>
import math

import jax
import jax.numpy as jnp
from jax import lax
from jax.experimental import pallas as pl
from jax.experimental.pallas import tpu as pltpu

LN_EPS = 1e-5
_INV_SQRT2 = 1.0 / math.sqrt(2.0)
_VMEM_CAP = None


# ---------------------------------------------------------------------------
# In-kernel helpers (all f32)
# ---------------------------------------------------------------------------
def _layernorm(v, w, b):
    mu = jnp.mean(v, axis=-1, keepdims=True)
    var = jnp.mean((v - mu) ** 2, axis=-1, keepdims=True)
    return (v - mu) * lax.rsqrt(var + LN_EPS) * w + b


def _gelu_exact(x):
    # Matches F.gelu default (approximate='none'): 0.5 x (1 + erf(x / sqrt(2)))
    # TODO(synk): optionally use tanh-approx GELU on v5e (EUP slot) if the deviation is acceptable.
    return 0.5 * x * (1.0 + lax.erf(x * _INV_SQRT2))


# ---------------------------------------------------------------------------
# Tiling / VMEM helpers
# ---------------------------------------------------------------------------
def _pick_tile(dim, target):
    if dim > target and dim % target == 0:
        return target
    # TODO(synk): pad ragged production shapes to a multiple of `target` instead of
    #             falling back to a full-extent block.
    return dim


def _vmem_cap_bytes():
    global _VMEM_CAP
    if _VMEM_CAP is None:
        try:
            cap = int(pltpu.get_tpu_info().vmem_capacity_bytes)
        except Exception:
            cap = 128 * 1024 * 1024
        _VMEM_CAP = int(cap * 0.85)   # leave headroom for compiler scratch / semaphores
    return _VMEM_CAP


def _vmem_budget(items, headroom=8 * 1024 * 1024):
    # items: list of (bytes_per_buffer, num_buffers)
    need = sum(int(nbytes) * int(bufs) for nbytes, bufs in items) + headroom
    return int(min(max(need, 16 * 1024 * 1024), _vmem_cap_bytes()))


_IDX0 = {
    1: lambda n: (lambda i: (0,) * n),
    2: lambda n: (lambda i, j: (0,) * n),
    3: lambda n: (lambda i, j, k: (0,) * n),
}


def _const_spec(shape, grid_rank):
    # Constant-index operands never re-DMA across grid steps -> single-buffer them.
    idx = _IDX0[grid_rank](len(shape))
    try:
        return pl.BlockSpec(shape, idx, pipeline_mode=pl.Buffered(1))
    except TypeError:   # older BlockSpec signature without pipeline_mode
        return pl.BlockSpec(shape, idx)


# ---------------------------------------------------------------------------
# Kernel 1: cond_projection   (N, F) @ (F, D) + (1, D), row-tiled
# ---------------------------------------------------------------------------
def _proj_kernel(x_ref, w_ref, b_ref, o_ref):
    x = x_ref[...].astype(jnp.bfloat16)
    o_ref[...] = (jnp.dot(x, w_ref[...], preferred_element_type=jnp.float32)
                  + b_ref[...])


def cond_projection(x, w_t, b, *, row_tile=512):
    # x: (N, F) f32, w_t: (F, D) bf16 (pre-transposed on host), b: (1, D) f32
    N, F = x.shape
    D = w_t.shape[1]
    tn = row_tile if N > row_tile else N
    grid = (pl.cdiv(N, tn),)                     # ragged tail masked (rows independent)
    vmem = _vmem_budget([
        (tn * F * 4, 2),          # x block (f32, double-buffered)
        (F * D * 2, 1),           # weight (bf16, single-buffered)
        (D * 4, 1),               # bias
        (tn * D * 4, 2),          # out block
    ])
    return pl.pallas_call(
        _proj_kernel,
        out_shape=jax.ShapeDtypeStruct((N, D), jnp.float32),
        grid=grid,
        in_specs=[pl.BlockSpec((tn, F), lambda i: (i, 0)),
                  _const_spec((F, D), 1),
                  _const_spec((1, D), 1)],
        out_specs=pl.BlockSpec((tn, D), lambda i: (i, 0)),
        compiler_params=pltpu.CompilerParams(
            dimension_semantics=("parallel",),
            vmem_limit_bytes=vmem),
    )(x, w_t, b)


# ---------------------------------------------------------------------------
# Kernel 2: fused LN1 + QKV projection (one (ts,E)@(E,3E) MXU pass)
# ---------------------------------------------------------------------------
def _qkv_kernel(x_ref, wqkv_ref, bqkv_ref, ln1w_ref, ln1b_ref,
                q_ref, k_ref, v_ref):
    E = x_ref.shape[-1]
    xn = _layernorm(x_ref[0], ln1w_ref[...], ln1b_ref[...]).astype(jnp.bfloat16)
    r = (jnp.dot(xn, wqkv_ref[...], preferred_element_type=jnp.float32)
         + bqkv_ref[...])                                      # (ts, 3E) f32
    # softmax scale is already folded into the Q columns / bias on the host
    q_ref[0] = r[:, :E].astype(jnp.bfloat16)
    k_ref[0] = r[:, E:2 * E].astype(jnp.bfloat16)
    v_ref[0] = r[:, 2 * E:].astype(jnp.bfloat16)


def qkv_projection(x, lp, *, seq_tile=256):
    B, S, E = x.shape
    ts = _pick_tile(S, seq_tile)
    grid = (B, S // ts)
    io_in = pl.BlockSpec((1, ts, E), lambda b, i: (b, i, 0))
    io_out = pl.BlockSpec((1, ts, E), lambda b, i: (b, i, 0))
    vmem = _vmem_budget([
        (ts * E * 4, 2),              # x block
        (E * 3 * E * 2, 1),           # fused QKV weight (bf16)
        (3 * E * 4, 1),               # fused bias
        (2 * E * 4, 1),               # ln1 params
        (3 * ts * E * 2, 2),          # three bf16 outputs
        (ts * 3 * E * 4, 1),          # r temporary
    ])
    return pl.pallas_call(
        _qkv_kernel,
        out_shape=tuple(jax.ShapeDtypeStruct((B, S, E), jnp.bfloat16) for _ in range(3)),
        grid=grid,
        in_specs=[io_in,
                  _const_spec((E, 3 * E), 2),
                  _const_spec((1, 3 * E), 2),
                  _const_spec((1, E), 2),
                  _const_spec((1, E), 2)],
        out_specs=(io_out, io_out, io_out),
        compiler_params=pltpu.CompilerParams(
            dimension_semantics=("parallel", "parallel"),
            vmem_limit_bytes=vmem),
    )(x, lp['wqkv'], lp['bqkv'], lp['ln1w'], lp['ln1b'])


# ---------------------------------------------------------------------------
# Kernel 3: flash-style attention + output projection + residual
#   grid = (B, q_tiles, kv_tiles), online softmax over kv tiles
# ---------------------------------------------------------------------------
def _make_attn_kernel(num_heads, head_dim):
    f32, bf16 = jnp.float32, jnp.bfloat16
    E = num_heads * head_dim

    def kernel(q_ref, k_ref, v_ref, x_ref, wo_ref, bo_ref, o_ref,
               m_sc, l_sc, acc_sc):
        ki = pl.program_id(2)

        @pl.when(ki == 0)
        def _():
            m_sc[...] = jnp.full_like(m_sc, -jnp.inf)
            l_sc[...] = jnp.zeros_like(l_sc)
            acc_sc[...] = jnp.zeros_like(acc_sc)

        tq = q_ref.shape[1]
        tk = k_ref.shape[1]

        def heads(t, tlen):
            # (tlen, E) -> (H, tlen, Dh) via reshape + transpose (no per-head slice loop)
            return jnp.transpose(t.reshape(tlen, num_heads, head_dim), (1, 0, 2))

        qh = heads(q_ref[0], tq)                               # bf16 (H, tq, Dh)
        kh = heads(k_ref[0], tk)
        vh = heads(v_ref[0], tk)

        s = jnp.einsum('hqd,hkd->hqk', qh, kh,
                       preferred_element_type=f32)             # (H, tq, tk) f32
        m_prev = m_sc[...]
        m_new = jnp.maximum(m_prev, jnp.max(s, axis=-1, keepdims=True))
        alpha = jnp.exp(m_prev - m_new)
        p = jnp.exp(s - m_new)
        l_sc[...] = alpha * l_sc[...] + jnp.sum(p, axis=-1, keepdims=True)
        acc_sc[...] = alpha * acc_sc[...] + jnp.einsum(
            'hqk,hkd->hqd', p.astype(bf16), vh, preferred_element_type=f32)
        m_sc[...] = m_new

        @pl.when(ki == pl.num_programs(2) - 1)
        def _():
            o = acc_sc[...] * pl.reciprocal(l_sc[...], approx=True)    # (H, tq, Dh) f32
            merged = jnp.transpose(o, (1, 0, 2)).reshape(tq, E)        # (tq, E)
            attn = (jnp.dot(merged.astype(bf16), wo_ref[...],
                            preferred_element_type=f32) + bo_ref[...])
            o_ref[0] = x_ref[0] + attn

    return kernel


def attention_block(x, q, k, v, lp, num_heads, *, q_tile=256, kv_tile=256):
    B, S, E = x.shape
    Dh = E // num_heads
    tq = _pick_tile(S, q_tile)
    tk = _pick_tile(S, kv_tile)
    grid = (B, S // tq, S // tk)
    kernel = _make_attn_kernel(num_heads, Dh)
    vmem = _vmem_budget([
        (tq * E * 2, 2),                       # q block (bf16)
        (tk * E * 2, 4),                       # k + v blocks
        (tq * E * 4, 2),                       # x residual block (f32)
        (E * E * 2, 1),                        # wo (bf16, single-buffered)
        (E * 4, 1),                            # bo
        (tq * E * 4, 2),                       # out block
        (num_heads * tq * Dh * 4, 1),          # acc scratch
        (2 * num_heads * tq * 128 * 4, 1),     # m/l scratch (lane padded)
        (num_heads * tq * tk * 6, 1),          # score + p temporaries
    ])
    return pl.pallas_call(
        kernel,
        out_shape=jax.ShapeDtypeStruct((B, S, E), jnp.float32),
        grid=grid,
        in_specs=[pl.BlockSpec((1, tq, E), lambda b, qi, ki: (b, qi, 0)),
                  pl.BlockSpec((1, tk, E), lambda b, qi, ki: (b, ki, 0)),
                  pl.BlockSpec((1, tk, E), lambda b, qi, ki: (b, ki, 0)),
                  pl.BlockSpec((1, tq, E), lambda b, qi, ki: (b, qi, 0)),
                  _const_spec((E, E), 3),
                  _const_spec((1, E), 3)],
        out_specs=pl.BlockSpec((1, tq, E), lambda b, qi, ki: (b, qi, 0)),
        scratch_shapes=[pltpu.VMEM((num_heads, tq, 1), jnp.float32),
                        pltpu.VMEM((num_heads, tq, 1), jnp.float32),
                        pltpu.VMEM((num_heads, tq, Dh), jnp.float32)],
        compiler_params=pltpu.CompilerParams(
            dimension_semantics=("parallel", "parallel", "arbitrary"),
            vmem_limit_bytes=vmem),
    )(q, k, v, x, lp['wo_t'], lp['bo'])


# ---------------------------------------------------------------------------
# Kernel 4: LN2 + FFN (tiled over the ff axis) + residual
#   grid = (row_tiles, ff_tiles); (tr, E) f32 accumulator scratch
# ---------------------------------------------------------------------------
def _ffn_kernel(x1_ref, ln2w_ref, ln2b_ref, w1_ref, b1_ref, w2_ref, b2_ref,
                o_ref, acc_sc, x2_sc):
    fi = pl.program_id(1)

    @pl.when(fi == 0)
    def _():
        acc_sc[...] = jnp.zeros_like(acc_sc)
        x2_sc[...] = _layernorm(x1_ref[...], ln2w_ref[...],
                                ln2b_ref[...]).astype(jnp.bfloat16)

    h1 = _gelu_exact(jnp.dot(x2_sc[...], w1_ref[...],
                             preferred_element_type=jnp.float32) + b1_ref[...])
    acc_sc[...] += jnp.dot(h1.astype(jnp.bfloat16), w2_ref[...],
                           preferred_element_type=jnp.float32)

    @pl.when(fi == pl.num_programs(1) - 1)
    def _():
        o_ref[...] = x1_ref[...] + acc_sc[...] + b2_ref[...]


def ffn_block(x1, lp, *, row_tile=256, ff_tile=512):
    # x1: (R, E) f32 (B*S rows flattened)
    R, E = x1.shape
    ff = lp['w1'].shape[1]
    tr = _pick_tile(R, row_tile)
    tff = _pick_tile(ff, ff_tile)
    grid = (R // tr, ff // tff)
    vmem = _vmem_budget([
        (tr * E * 4, 2),          # x1 block
        (2 * E * 4, 1),           # ln2 params
        (E * tff * 2, 2),         # w1 slice (streamed over ff)
        (tff * 4, 2),             # b1 slice
        (tff * E * 2, 2),         # w2 slice
        (E * 4, 1),               # b2
        (tr * E * 4, 2),          # out block
        (tr * E * 6, 1),          # acc (f32) + x2 (bf16) scratch
        (tr * tff * 4, 1),        # h1 temporary
    ])
    return pl.pallas_call(
        _ffn_kernel,
        out_shape=jax.ShapeDtypeStruct((R, E), jnp.float32),
        grid=grid,
        in_specs=[pl.BlockSpec((tr, E), lambda ri, fi: (ri, 0)),
                  _const_spec((1, E), 2),
                  _const_spec((1, E), 2),
                  pl.BlockSpec((E, tff), lambda ri, fi: (0, fi)),
                  pl.BlockSpec((1, tff), lambda ri, fi: (0, fi)),
                  pl.BlockSpec((tff, E), lambda ri, fi: (fi, 0)),
                  _const_spec((1, E), 2)],
        out_specs=pl.BlockSpec((tr, E), lambda ri, fi: (ri, 0)),
        scratch_shapes=[pltpu.VMEM((tr, E), jnp.float32),
                        pltpu.VMEM((tr, E), jnp.bfloat16)],
        compiler_params=pltpu.CompilerParams(
            dimension_semantics=("parallel", "arbitrary"),
            vmem_limit_bytes=vmem),
    )(x1, lp['ln2w'], lp['ln2b'], lp['w1'], lp['b1'], lp['w2'], lp['b2'])


# ---------------------------------------------------------------------------
# Encoder layer + top-level forward (glue in plain JAX)
# ---------------------------------------------------------------------------
def encoder_layer(x, lp, num_heads):
    B, S, E = x.shape
    q, k, v = qkv_projection(x, lp)
    x1 = attention_block(x, q, k, v, lp, num_heads)
    out = ffn_block(x1.reshape(B * S, E), lp)
    return out.reshape(B, S, E)


def transformer_encoder_forward(src, prep, num_heads):
    # src: (S, B, cond_feature_dim) — PyTorch batch_first=False convention
    S, B, F = src.shape
    D = prep['proj_wt'].shape[1]
    cond = cond_projection(src.reshape(S * B, F), prep['proj_wt'], prep['proj_b'])
    cond = cond.reshape(S, B, D).transpose(1, 0, 2)          # (B, S, D)
    # The reference module feeds cond_tokens to EVERY layer, so only the last layer's
    # output is returned — run just that layer (dead-compute elimination, same result).
    out = encoder_layer(cond, prep['layers'][-1], num_heads)
    return out.transpose(1, 0, 2)                            # back to (S, B, D)


# ---------------------------------------------------------------------------
# Host-side one-time parameter prep (transpose / fold scale / fuse QKV / bf16)
# ---------------------------------------------------------------------------
def prepare_params(raw, num_heads):
    bf = lambda a: a.astype(jnp.bfloat16)
    D = raw['proj_w'].shape[0]
    Dh = D // num_heads
    scale = 1.0 / math.sqrt(Dh)
    prep = dict(proj_wt=bf(raw['proj_w'].T), proj_b=raw['proj_b'], layers=[])
    for p in raw['layers']:
        wqkv = jnp.concatenate([p['wq'].T * scale, p['wk'].T, p['wv'].T], axis=1)  # (E, 3E)
        bqkv = jnp.concatenate([p['bq'] * scale, p['bk'], p['bv']], axis=1)        # (1, 3E)
        prep['layers'].append(dict(
            wqkv=bf(wqkv), bqkv=bqkv,                        # softmax scale folded into Q cols
            wo_t=bf(p['wo'].T), bo=p['bo'],
            ln1w=p['ln1w'], ln1b=p['ln1b'], ln2w=p['ln2w'], ln2b=p['ln2b'],
            w1=bf(p['w1'].T), b1=p['b1'],                    # (E, ff), (1, ff)
            w2=bf(p['w2'].T), b2=p['b2'],                    # (ff, E), (1, E)
        ))
    return prep


# ---------------------------------------------------------------------------
# Deterministic parameter init (synthetic; PyTorch layout)
# ---------------------------------------------------------------------------
def init_params(key, cond_feature_dim, num_layers, latent_dim, ff_size):
    def dense(k, out_dim, in_dim):
        kw, kb = jax.random.split(k)
        w = jax.random.normal(kw, (out_dim, in_dim), jnp.float32) * 0.05
        b = jax.random.normal(kb, (1, out_dim), jnp.float32) * 0.05
        return w, b

    keys = jax.random.split(key, 1 + num_layers)
    proj_w, proj_b = dense(keys[0], latent_dim, cond_feature_dim)
    layers = []
    for li in range(num_layers):
        ks = jax.random.split(keys[1 + li], 10)
        wq, bq = dense(ks[0], latent_dim, latent_dim)
        wk, bk = dense(ks[1], latent_dim, latent_dim)
        wv, bv = dense(ks[2], latent_dim, latent_dim)
        wo, bo = dense(ks[3], latent_dim, latent_dim)
        w1, b1 = dense(ks[4], ff_size, latent_dim)
        w2, b2 = dense(ks[5], latent_dim, ff_size)
        ln1w = 1.0 + 0.1 * jax.random.normal(ks[6], (1, latent_dim), jnp.float32)
        ln1b = 0.1 * jax.random.normal(ks[7], (1, latent_dim), jnp.float32)
        ln2w = 1.0 + 0.1 * jax.random.normal(ks[8], (1, latent_dim), jnp.float32)
        ln2b = 0.1 * jax.random.normal(ks[9], (1, latent_dim), jnp.float32)
        layers.append(dict(wq=wq, wk=wk, wv=wv, bq=bq, bk=bk, bv=bv,
                           wo=wo, bo=bo, ln1w=ln1w, ln1b=ln1b,
                           ln2w=ln2w, ln2b=ln2b, w1=w1, b1=b1, w2=w2, b2=b2))
    return dict(proj_w=proj_w, proj_b=proj_b, layers=layers)


# ---------------------------------------------------------------------------
# References for correctness checks
# ---------------------------------------------------------------------------
def reference_pytorch(src, raw, num_heads):
    # Faithful f32 mirror of the PyTorch module (loops layers over cond_tokens).
    S, B, F = src.shape
    D = raw['proj_w'].shape[0]
    Dh = D // num_heads

    def ln(v, w, b):
        mu = v.mean(-1, keepdims=True)
        var = ((v - mu) ** 2).mean(-1, keepdims=True)
        return (v - mu) / jnp.sqrt(var + LN_EPS) * w + b

    cond = src.reshape(S * B, F) @ raw['proj_w'].T + raw['proj_b']
    cond = cond.reshape(S, B, D).transpose(1, 0, 2)
    out = cond
    for p in raw['layers']:
        x = cond                                           # module quirk: every layer sees cond
        xn = ln(x, p['ln1w'], p['ln1b'])
        q = xn @ p['wq'].T + p['bq']
        k = xn @ p['wk'].T + p['bk']
        v = xn @ p['wv'].T + p['bv']

        def split(t):
            return t.reshape(B, S, num_heads, Dh).transpose(0, 2, 1, 3)

        qh, kh, vh = split(q), split(k), split(v)
        sc = jnp.einsum('bhqd,bhkd->bhqk', qh, kh) / math.sqrt(Dh)
        pr = jax.nn.softmax(sc, axis=-1)
        ao = jnp.einsum('bhqk,bhkd->bhqd', pr, vh).transpose(0, 2, 1, 3).reshape(B, S, D)
        ao = ao @ p['wo'].T + p['bo']
        x1 = x + ao
        x2 = ln(x1, p['ln2w'], p['ln2b'])
        h1 = jax.nn.gelu(x2 @ p['w1'].T + p['b1'], approximate=False)
        out = x1 + h1 @ p['w2'].T + p['b2']
    return out.transpose(1, 0, 2)


def reference_mixed(src, prep, num_heads):
    # Mirrors the kernels' bf16 cast points exactly (f32 LN/softmax/residuals), in plain JAX.
    bf16, f32 = jnp.bfloat16, jnp.float32
    S, B, F = src.shape
    D = prep['proj_wt'].shape[1]
    H, Dh, E = num_heads, D // num_heads, D

    def ln(v, w, b):
        mu = v.mean(-1, keepdims=True)
        var = ((v - mu) ** 2).mean(-1, keepdims=True)
        return (v - mu) * lax.rsqrt(var + LN_EPS) * w + b

    cond = (jnp.dot(src.reshape(S * B, F).astype(bf16), prep['proj_wt'],
                    preferred_element_type=f32) + prep['proj_b'])
    cond = cond.reshape(S, B, D).transpose(1, 0, 2)
    p = prep['layers'][-1]
    x = cond
    xn = ln(x, p['ln1w'], p['ln1b']).astype(bf16)
    r = jnp.einsum('bse,ef->bsf', xn, p['wqkv'], preferred_element_type=f32) + p['bqkv']
    q = r[..., :E].astype(bf16)
    k = r[..., E:2 * E].astype(bf16)
    v = r[..., 2 * E:].astype(bf16)

    def split(t):
        return t.reshape(B, S, H, Dh).transpose(0, 2, 1, 3)

    qh, kh, vh = split(q), split(k), split(v)
    sc = jnp.einsum('bhqd,bhkd->bhqk', qh, kh, preferred_element_type=f32)
    sc = sc - sc.max(-1, keepdims=True)
    e = jnp.exp(sc)
    pr = e / e.sum(-1, keepdims=True)
    ao = jnp.einsum('bhqk,bhkd->bhqd', pr.astype(bf16), vh, preferred_element_type=f32)
    merged = ao.transpose(0, 2, 1, 3).reshape(B, S, E)
    attn = jnp.einsum('bse,ef->bsf', merged.astype(bf16), p['wo_t'],
                      preferred_element_type=f32) + p['bo']
    x1 = x + attn
    x2 = ln(x1, p['ln2w'], p['ln2b']).astype(bf16)
    h1 = _gelu_exact(jnp.einsum('bse,ef->bsf', x2, p['w1'],
                                preferred_element_type=f32) + p['b1'])
    ff = jnp.einsum('bsf,fe->bse', h1.astype(bf16), p['w2'],
                    preferred_element_type=f32) + p['b2']
    return (x1 + ff).transpose(1, 0, 2)


if __name__ == "__main__":
    S, B = 8, 2
    cond_feature_dim, latent_dim, num_heads, ff_size, num_layers = 16, 32, 4, 64, 2

    key = jax.random.PRNGKey(0)
    pkey, xkey = jax.random.split(key)
    raw = init_params(pkey, cond_feature_dim, num_layers, latent_dim, ff_size)
    prep = prepare_params(raw, num_heads)
    src = jax.random.normal(xkey, (S, B, cond_feature_dim), jnp.float32)

    out = transformer_encoder_forward(src, prep, num_heads)
    out = jax.block_until_ready(out)
    assert out.shape == (S, B, latent_dim), out.shape

    # Tight structural check against a JAX mirror with identical bf16 cast points.
    ref_m = reference_mixed(src, prep, num_heads)
    err_m = float(jnp.max(jnp.abs(out - ref_m)))
    assert jnp.allclose(out, ref_m, atol=1e-2, rtol=1e-2), f"mixed max_err={err_m}"

    # Looser end-to-end check against the faithful f32 PyTorch-style reference.
    ref_f = reference_pytorch(src, raw, num_heads)
    err_f = float(jnp.max(jnp.abs(out - ref_f)))
    assert jnp.allclose(out, ref_f, atol=5e-2, rtol=5e-2), f"f32 max_err={err_f}"

    print("KERNEL_OK")
</pallas_src>

<mosaic_0001>
module attributes {stable_mosaic.version = 11 : i64} {
  func.func @_proj_kernel(%arg0: i32, %arg1: memref<16x16xf32, #tpu.memory_space<vmem>>, %arg2: memref<16x32xbf16, #tpu.memory_space<vmem>>, %arg3: memref<1x32xf32, #tpu.memory_space<vmem>>, %arg4: memref<16x32xf32, #tpu.memory_space<vmem>>) attributes {dimension_semantics = [#tpu.dimension_semantics<parallel>], iteration_bounds = array<i64: 1>, scalar_prefetch = 0 : i64, scratch_operands = 0 : i64, tpu.core_type = #tpu.core_type<tc>, window_params = [{transform_indices = @transform_0, window_bounds = array<i64: 16, 16>}, {pipeline_mode = #tpu.pipeline_mode<synchronous>, transform_indices = @transform_1, window_bounds = array<i64: 16, 32>}, {pipeline_mode = #tpu.pipeline_mode<synchronous>, transform_indices = @transform_2, window_bounds = array<i64: 1, 32>}, {transform_indices = @transform_3, window_bounds = array<i64: 16, 32>}]} {
    %c0 = arith.constant 0 : index
    %c0_0 = arith.constant 0 : index
    %0 = vector.load %arg1[%c0, %c0_0] : memref<16x16xf32, #tpu.memory_space<vmem>>, vector<16x16xf32>
    %1 = arith.truncf %0 : vector<16x16xf32> to vector<16x16xbf16>
    %c0_1 = arith.constant 0 : index
    %c0_2 = arith.constant 0 : index
    %2 = vector.load %arg2[%c0_1, %c0_2] : memref<16x32xbf16, #tpu.memory_space<vmem>>, vector<16x32xbf16>
    %cst = arith.constant dense<0.000000e+00> : vector<16x32xf32>
    %3 = tpu.matmul %1, %2, %cst {dimension_numbers = #tpu.dot_dimension_numbers<[1], [0], [0], [1], [0, 0, 1, 1], [], []>} : vector<16x16xbf16>, vector<16x32xbf16>, vector<16x32xf32> -> vector<16x32xf32>
    %c0_3 = arith.constant 0 : index
    %c0_4 = arith.constant 0 : index
    %4 = vector.load %arg3[%c0_3, %c0_4] : memref<1x32xf32, #tpu.memory_space<vmem>>, vector<1x32xf32>
    %5 = vector.broadcast %4 : vector<1x32xf32> to vector<16x32xf32>
    %6 = arith.addf %3, %5 : vector<16x32xf32>
    %c0_5 = arith.constant 0 : index
    %c0_6 = arith.constant 0 : index
    %7 = vector.load %arg4[%c0_5, %c0_6] : memref<16x32xf32, #tpu.memory_space<vmem>>, vector<16x32xf32>
    tpu.vector_store %arg4[%c0_5, %c0_6], %6 {strides = array<i32>} : memref<16x32xf32, #tpu.memory_space<vmem>>, vector<16x32xf32>,
    return
  }
  func.func @transform_0(%arg0: i32) -> (i32, i32) {
    %c0_i32 = arith.constant 0 : i32
    %c0_i32_0 = arith.constant 0 : i32
    return %arg0, %c0_i32 : i32, i32
  }
  func.func @transform_1(%arg0: i32) -> (i32, i32) {
    %c0_i32 = arith.constant 0 : i32
    %c0_i32_0 = arith.constant 0 : i32
    %c0_i32_1 = arith.constant 0 : i32
    return %c0_i32, %c0_i32_0 : i32, i32
  }
  func.func @transform_2(%arg0: i32) -> (i32, i32) {
    %c0_i32 = arith.constant 0 : i32
    %c0_i32_0 = arith.constant 0 : i32
    %c0_i32_1 = arith.constant 0 : i32
    return %c0_i32, %c0_i32_0 : i32, i32
  }
  func.func @transform_3(%arg0: i32) -> (i32, i32) {
    %c0_i32 = arith.constant 0 : i32
    %c0_i32_0 = arith.constant 0 : i32
    return %arg0, %c0_i32 : i32, i32
  }
}

</mosaic_0001>

<bundles_post_ra>
// kernel: tpu_custom_call.1
= control target key start
LH: loop header
LB: loop body
LE: loop exit
PB: predicated region body
PF: predicated region fallthrough
CT: control target
= control target key end

     0   :  { %8 = vsyncpa [#allocation3], 0  ;;  %s295_s0 = inlined_call_operand.hbm [shape: f32[16,16], index: 0, kind: input, shape index: {}]   ;;  %s296_s1 = inlined_call_operand.hbm [shape: bf16[16,32], index: 1, kind: input, shape index: {}]   ;;  %s297_s2 = inlined_call_operand.vmem [shape: f32[1,32], index: 2, kind: input, shape index: {}]   ;;  %s298_s3 = inlined_call_operand.hbm [shape: f32[16,32], index: 3, kind: output, shape index: {}]  }
   0x1   :  { %9 = vsyncpa [#allocation6], 0 }
   0x2   :  { %10 = vsyncpa [#allocation4], 0  ;;  %s221_s12 = smov [#allocation2]   ;;  %s149_s16 = scalar_lea.hbm %s295_s0, 256 }
   0x3   :  { %s16_s13 = sshll.u32 %s221_s12, 4  ;;  %p150_p0 = scmp.ne.s32.totalorder %s295_s0, %s149_s16  ;;  %s17_s13 = int_to_ptr.vmem [resolvable:$true] %s16_s13 }
   0x4   :  { %p153_p1 = scmp.lt.u32.totalorder %s149_s16, %s295_s0 }
   0x6   :  { %p155_p2 = pnand %p153_p1, %p150_p0 }
   0x8   :  { %158 = shalt.err (!%p155_p2)
}
   0x9   :  { %s159_s21 = scalar_lea.vmem %s17_s13, 256  ;;  %p164_p4 = scmp.lt.s32.totalorder %s17_s13, %s17_s13 }
   0xa   :  { %p160_p3 = scmp.ne.s32.totalorder %s17_s13, %s159_s21  ;;  %p165_p5 = scmp.lt.s32.totalorder %s159_s21, %s159_s21 }
   0xc   :  { %p166_p6 = por %p165_p5, %p164_p4 }
   0xe   :  { %p167_p7 = pnand %p166_p6, %p160_p3 }
  0x10   :  { %170 = shalt.err (!%p167_p7)
}
  0x11   :  { %s222_s22 = smov 128   ;;  %s223_s23 = smov 8  }
  0x12   :  { %22 = dma.hbm_to_vmem [thread:$0]  %s295_s0, 256, %s17_s13, [#allocation3], %s222_s22, %s222_s22, %s223_s23  }
  0x13   :  { %s224_s26 = smov [#allocation5]   ;;  %s171_s30 = scalar_lea.hbm %s296_s1, 128 }
  0x14   :  { %s28_s27 = sshll.u32 %s224_s26, 4  ;;  %p172_p8 = scmp.ne.s32.totalorder %s296_s1, %s171_s30  ;;  %s29_s27 = int_to_ptr.vmem [resolvable:$true] %s28_s27 }
  0x15   :  { %p175_p9 = scmp.lt.u32.totalorder %s171_s30, %s296_s1 }
  0x17   :  { %p177_p10 = pnand %p175_p9, %p172_p8 }
  0x19   :  { %180 = shalt.err (!%p177_p10)
}
  0x1a   :  { %s181_s8 = scalar_lea.vmem %s29_s27, 128  ;;  %p186_p12 = scmp.lt.s32.totalorder %s29_s27, %s29_s27 }
  0x1b   :  { %p182_p11 = scmp.ne.s32.totalorder %s29_s27, %s181_s8  ;;  %p187_p13 = scmp.lt.s32.totalorder %s181_s8, %s181_s8 }
  0x1d   :  { %p188_p0 = por %p187_p13, %p186_p12 }
  0x1f   :  { %p189_p1 = pnand %p188_p0, %p182_p11 }
  0x21   :  { %192 = shalt.err (!%p189_p1)
}
  0x22   :  { %s225_s0 = smov 64   ;;  %s226_s9 = smov 4  }
  0x23   :  { %34 = dma.hbm_to_vmem [thread:$0]  %s296_s1, 128, %s29_s27, [#allocation6], %s225_s0, %s225_s0, %s226_s9  }
  0x24   :  { %215 = dma.done.wait [#allocation3], 256  }
  0x25   :  { %216 = vsyncadd [#allocation3], 4294967040 }
  0x26   :  { %217 = dma.done.wait [#allocation6], 128  }
  0x27   :  { %218 = vsyncadd [#allocation6], 4294967168  ;;  %v227_v0 = vmov 0.0   ;;  %vm228_vm0 = vmmov 0   ;;  %v148_v1 = vld [vmem:[#allocation5] sm:$0xff]   ;;  %v44_v2 = vld [vmem:[#allocation2] sm:$0xff] }
  0x28   :  { %133 = vmatprep.subr.bf16.mxu0 %v227_v0  ;;  %135 = vmatprep.mubr.msk.bf16.mxu0 %vm228_vm0, %v227_v0  ;;  %v45_v3 = vld [vmem:[#allocation2 + $0x8] sm:$0xff]  ;;  %vm62_vm1 = vcmask 130048   ;;  %v128_v5 = vld [vmem:[%s297_s2] ss:$0 sm:$0xff]  ;;  %vm107_vm2 = vcmask 261120   ;;  %s229_s1 = smov [#allocation7]  }
  0x29   :  { %134 = vmatpush3.bf16.msra.mxu0 %v148_v1  ;;  %v46_v4 = vpack.c.bf16 %v45_v3, %v44_v2  ;;  %s115_s14 = sshll.u32 %s229_s1, 4  ;;  %s116_s14 = int_to_ptr.vmem [resolvable:$true] %s115_s14 }
  0x2a   :  { %s193_s15 = scalar_lea.vmem %s116_s14, 256  ;;  %p198_p3 = scmp.lt.s32.totalorder %s116_s14, %s116_s14 }
  0x2b   :  { %p194_p2 = scmp.ne.s32.totalorder %s116_s14, %s193_s15  ;;  %p199_p4 = scmp.lt.s32.totalorder %s193_s15, %s193_s15 }
  0x2c   :  { %136 = vmatmul.mubr.msk.bf16.vlgmr.msra.gmra.mrb[0].mxu0 %vm62_vm1, %v46_v4 }
  0x2d   :  { %p200_p5 = por %p199_p4, %p198_p3 }
  0x2f   :  { %p201_p6 = pnand %p200_p5, %p194_p2 }
  0xff   :  { %v100_v6 = vpop.f32.mrb[0].mxu0 }
 0x100   :  { %v101_v7 = vadd.f32 %v128_v5, %v100_v6  ;;  %v137_v8 = vpop.f32.mrb[1].mxu0 }
 0x101   :  { %v103_v9 = vpop.f32.mrb[2].mxu0 }
 0x102   :  { %v104_v10 = vadd.f32 %v128_v5, %v103_v9  ;;  %v138_v11 = vpop.f32.mrb[3].mxu0  ;;  %108 = vst.msk [vmem:[#allocation7] sm:$0xff] %vm107_vm2, %v101_v7 }
 0x104   :  { %109 = vst.msk [vmem:[#allocation7 + $0x8] sm:$0xff] %vm107_vm2, %v104_v10 }
 0x105   :  { %204 = shalt.err (!%p201_p6)
}
 0x106   :  { %s205_s17 = scalar_lea.hbm %s298_s3, 256 }
 0x107   :  { %p206_p7 = scmp.ne.s32.totalorder %s298_s3, %s205_s17  ;;  %p209_p8 = scmp.lt.u32.totalorder %s205_s17, %s298_s3 }
 0x109   :  { %p211_p9 = pnand %p209_p8, %p206_p7 }
 0x10b   :  { %214 = shalt.err (!%p211_p9)
}
 0x10c   :  { %121 = dma.vmem_to_hbm [thread:$0]  %s116_s14, 256, %s298_s3, [#allocation4], %s222_s22, %s222_s22, %s223_s23  }
 0x10d   :  { %219 = dma.done.wait [#allocation4], 256  }
 0x10e   :  { %220 = vsyncadd [#allocation4], 4294967040 }
 0x10f   :  { %125 = vsyncpa [#allocation3], 1 }
 0x110   :  { %126 = vsyncpa [#allocation6], 1 }
 0x111   :  { %127 = vsyncpa [#allocation4], 1 }

</bundles_post_ra>
